<compile_context>
chip_gen: v7x
topology: tpu7x:2x2x1
jax: 0.10.0
libtpu: 0.0.40
codegen_flags: <defaults>
</compile_context>

<pallas_src>
import jax
import jax.numpy as jnp
import numpy as np
from jax.experimental import pallas as pl
from jax.experimental.pallas import tpu as pltpu


def _round_up(x, m):
    return (x + m - 1) // m * m


def _vmem_limit_bytes():
    """Generation-aware scoped-VMEM limit (v5e/v6e: 128 MiB phys, v7x: 64 MiB phys)."""
    try:
        info = pltpu.get_tpu_info()
        cap = int(getattr(info, "vmem_capacity_bytes", 64 * 1024 * 1024))
    except Exception:
        cap = 64 * 1024 * 1024
    return min(int(cap * 0.8), 100 * 1024 * 1024)


def _row_tile(m, cap=512):
    """Largest divisor of m that is a multiple of 8 and <= cap."""
    best, d = 8, 8
    while d <= min(m, cap):
        if m % d == 0:
            best = d
        d += 8
    return best


def _lane_tile(n, cap=512):
    """Largest divisor of n that is a multiple of 128 and <= cap (n is a mult of 128)."""
    best, d = 128, 128
    while d <= min(n, cap):
        if n % d == 0:
            best = d
        d += 128
    return best


def _choose_time_chunk(T, Bp, Hp, vmem_limit):
    """Time-chunk size for the recurrence: VMEM-budgeted (incl. resident weights), then
    T is padded up to a multiple of it (no degenerate tc=1 for awkward T)."""
    G = 3 * Hp
    resident = 2 * (Hp * G * 2) + 2 * Bp * Hp * 4 + 2 * Hp * 4   # W_hh(bf16, 2 bufs) + scratch
    per_step = Bp * (G + Hp) * 2                                  # bf16 gi block + bf16 out block
    avail = max(vmem_limit // 2 - resident, 2 * per_step)
    cap = max(1, avail // (2 * per_step))                         # in/out blocks double-buffered
    tc = int(min(T, cap, 1024))
    Tp = _round_up(T, tc)
    return tc, Tp


# ----------------------------------------------------------------------------
# Kernel 1: hoisted, direction+gate-fused input projection.
#   gi_all = x @ W_ih_fused + b_fused, stored bf16.
#   Columns [0:3Hp] = forward gates (r|z|n), [3Hp:6Hp] = backward gates.
# ----------------------------------------------------------------------------
def _proj_kernel(x_ref, w_ref, b_ref, o_ref):
    acc = jnp.dot(x_ref[...], w_ref[...], preferred_element_type=jnp.float32)
    o_ref[...] = (acc + b_ref[...]).astype(o_ref.dtype)


def input_proj(x2d, w, b, vmem_limit):
    """x2d: (M, K) bf16; w: (K, 6Hp) bf16; b: (1, 6Hp) f32 -> (M, 6Hp) bf16."""
    M, K = x2d.shape
    N = w.shape[1]
    tm = _row_tile(M)
    tn = _lane_tile(N)                       # bounds weight VMEM independent of Hp
    cost = pl.CostEstimate(
        flops=2 * M * K * N,
        transcendentals=0,
        bytes_accessed=M * K * 2 + K * N * 2 + N * 4 + M * N * 2,
    )
    return pl.pallas_call(
        _proj_kernel,
        out_shape=jax.ShapeDtypeStruct((M, N), jnp.bfloat16),
        grid_spec=pltpu.PrefetchScalarGridSpec(
            num_scalar_prefetch=0,
            grid=(M // tm, N // tn),
            in_specs=[
                pl.BlockSpec((tm, K), lambda i, j: (i, 0)),
                pl.BlockSpec((K, tn), lambda i, j: (0, j)),
                pl.BlockSpec((1, tn), lambda i, j: (0, j)),
            ],
            out_specs=pl.BlockSpec((tm, tn), lambda i, j: (i, j)),
        ),
        compiler_params=pltpu.CompilerParams(
            dimension_semantics=("parallel", "parallel"),
            vmem_limit_bytes=vmem_limit),
        cost_estimate=cost,
    )(x2d, w, b)


# ----------------------------------------------------------------------------
# Kernel 2: bidirectional GRU recurrence for one layer.
# grid = (2 directions, T-chunks); direction axis is "parallel" (2 TCs on v7x).
# Backward-direction time reversal is handled purely by the index_map + local index.
#   r = sig(gi_r + h W_hr)           (b_ir + b_hr already folded into gi_r)
#   z = sig(gi_z + h W_hz)
#   n = tanh(gi_n + r * (h W_hn + b_hn))
#   h' = n + z*(h - n)               (== (1-z)*n + z*h)
# ----------------------------------------------------------------------------
def _make_bigru_kernel(tc, Hp, nc, T_real, Tp, Bp):
    needs_mask = (Tp != T_real)              # static: only emit masking if T was padded

    def kernel(gi_ref, whh_ref, bhn_ref, out_ref, h_scr):
        d = pl.program_id(0)                 # direction: 0 = forward, 1 = backward
        c = pl.program_id(1)                 # chunk index (walks reversed chunks when d==1)

        @pl.when(c == 0)
        def _():
            h_scr[...] = jnp.zeros_like(h_scr)

        # Hoisted bias broadcast (JAX does not CSE broadcast_in_dim inside the loop).
        bn = jnp.broadcast_to(bhn_ref[0], (Bp, Hp))
        # forward-time index of row 0 of this chunk (index_map already reversed chunks)
        chunk_base = (c + d * (nc - 1 - 2 * c)) * tc

        def step(j, h):
            # local (within-chunk) forward-time index: j for fwd, tc-1-j for bwd
            jj = j + d * (tc - 1 - 2 * j)
            gi = gi_ref[jj].astype(jnp.float32)                      # (Bp, 3Hp)
            gh = jnp.dot(h.astype(jnp.bfloat16), whh_ref[0],
                         preferred_element_type=jnp.float32)         # (Bp, 3Hp)
            r = jax.nn.sigmoid(gi[:, :Hp] + gh[:, :Hp])
            z = jax.nn.sigmoid(gi[:, Hp:2 * Hp] + gh[:, Hp:2 * Hp])
            n = jnp.tanh(gi[:, 2 * Hp:] + r * (gh[:, 2 * Hp:] + bn))
            h_new = n + z * (h - n)
            if needs_mask:                    # padded timesteps are no-ops for the state
                h_new = jnp.where(chunk_base + jj < T_real, h_new, h)
            out_ref[jj] = h_new.astype(out_ref.dtype)
            return h_new

        # Hidden state lives in the loop carry (vregs); scratch only at chunk entry/exit.
        unroll = tc if tc <= 8 else 4
        h_final = jax.lax.fori_loop(0, tc, step, h_scr[...], unroll=unroll)
        h_scr[...] = h_final

    return kernel


def bigru_layer(gi, w_hh, b_hn, tc, T_real, vmem_limit):
    """gi: (Tp, Bp, 6Hp) bf16 (fwd gates in lanes [:3Hp], bwd in [3Hp:]), forward time order.
    Returns (Tp, Bp, 2Hp) bf16: fwd outputs in lanes [:Hp], bwd outputs (forward time order)
    in lanes [Hp:]."""
    Tp, Bp, G2 = gi.shape
    G = G2 // 2
    Hp = G // 3
    nc = Tp // tc
    kernel = _make_bigru_kernel(tc, Hp, nc, T_real, Tp, Bp)

    def t_idx(d, c):                          # time reversal via index_map (no HBM flip)
        return c + d * (nc - 1 - 2 * c)

    gi_spec = pl.BlockSpec((tc, Bp, G), lambda d, c: (t_idx(d, c), 0, d))
    out_spec = pl.BlockSpec((tc, Bp, Hp), lambda d, c: (t_idx(d, c), 0, d))

    # Per-direction weight block is constant across the long time axis; single-buffer it
    # when large so it does not pay 2x VMEM.
    whh_kwargs = {}
    if Hp * G * 2 >= (2 << 20) and hasattr(pl, "Buffered"):
        whh_kwargs["pipeline_mode"] = pl.Buffered(1)
    whh_spec = pl.BlockSpec((1, Hp, G), lambda d, c: (d, 0, 0), **whh_kwargs)
    bhn_spec = pl.BlockSpec((1, 1, Hp), lambda d, c: (d, 0, 0))

    return pl.pallas_call(
        kernel,
        out_shape=jax.ShapeDtypeStruct((Tp, Bp, 2 * Hp), jnp.bfloat16),
        grid_spec=pltpu.PrefetchScalarGridSpec(
            num_scalar_prefetch=0,
            grid=(2, nc),
            in_specs=[gi_spec, whh_spec, bhn_spec],
            out_specs=out_spec,
            scratch_shapes=[pltpu.VMEM((Bp, Hp), jnp.float32)],
        ),
        compiler_params=pltpu.CompilerParams(
            dimension_semantics=("parallel", "arbitrary"),
            vmem_limit_bytes=vmem_limit),
    )(gi, w_hh, b_hn)


# ----------------------------------------------------------------------------
# Kernel 3: final fully-connected layer (weights pre-transposed / pre-padded).
# ----------------------------------------------------------------------------
def _linear_kernel(x_ref, w_ref, b_ref, o_ref):
    x = x_ref[...].astype(jnp.float32)
    o_ref[...] = jnp.dot(x, w_ref[...], preferred_element_type=jnp.float32) + b_ref[...]


def linear(x, w_t, b):
    """x: (B, F) bf16; w_t: (F, O) f32; b: (1, O) f32 -> (B, O) f32."""
    B, F = x.shape
    O = w_t.shape[1]
    return pl.pallas_call(
        _linear_kernel,
        out_shape=jax.ShapeDtypeStruct((B, O), jnp.float32),
        grid=(1,),
        in_specs=[
            pl.BlockSpec((B, F), lambda i: (0, 0)),
            pl.BlockSpec((F, O), lambda i: (0, 0)),
            pl.BlockSpec((1, O), lambda i: (0, 0)),
        ],
        out_specs=pl.BlockSpec((B, O), lambda i: (0, 0)),
    )(x, w_t, b)


# ----------------------------------------------------------------------------
# Parameter preparation: pad to (8,128)-friendly shapes, fuse directions+gates along
# lanes, fold r/z recurrent biases into the projection bias, pre-transpose, cast bf16.
# ----------------------------------------------------------------------------
def prepare_params(params, hidden_dim):
    H = hidden_dim
    Hp = _round_up(H, 128)
    G = 3 * Hp
    E = params["embedding"].shape[1]
    Ep = _round_up(E, 128)

    emb = jnp.zeros((params["embedding"].shape[0], Ep), jnp.float32)
    emb = emb.at[:, :E].set(params["embedding"])
    prep = {"embedding": emb.astype(jnp.bfloat16), "H": H, "Hp": Hp}

    layers = []
    for li, p in enumerate(params["gru"]):
        if li == 0:
            segments = [(0, E, 0)]             # (src_start, length, dst_start) along K
            Kp = Ep
        else:                                  # input = previous layer output (Tp,Bp,2Hp)
            segments = [(0, H, 0), (H, H, Hp)]
            Kp = 2 * Hp
        w_ih = jnp.zeros((Kp, 2 * G), jnp.float32)   # [fwd gates | bwd gates] along lanes
        b_gi = jnp.zeros((1, 2 * G), jnp.float32)
        w_hh = jnp.zeros((2, Hp, G), jnp.float32)    # stacked per direction
        b_hn = jnp.zeros((2, 1, Hp), jnp.float32)
        for di, d in enumerate(("f", "b")):
            wih_t = p[f"w_ih_{d}"].T            # (K_true, 3H), gate order r|z|n
            whh_t = p[f"w_hh_{d}"].T            # (H, 3H)
            b_ih = p[f"b_ih_{d}"]
            b_hh = p[f"b_hh_{d}"]
            col0 = di * G
            for g in range(3):
                for (src, ln, dst) in segments:
                    w_ih = w_ih.at[dst:dst + ln, col0 + g * Hp: col0 + g * Hp + H].set(
                        wih_t[src:src + ln, g * H:(g + 1) * H])
                w_hh = w_hh.at[di, :H, g * Hp:g * Hp + H].set(whh_t[:, g * H:(g + 1) * H])
                bias = b_ih[g * H:(g + 1) * H]
                if g < 2:                        # fold b_hr / b_hz into the projection bias
                    bias = bias + b_hh[g * H:(g + 1) * H]
                b_gi = b_gi.at[0, col0 + g * Hp: col0 + g * Hp + H].set(bias)
            b_hn = b_hn.at[di, 0, :H].set(b_hh[2 * H:3 * H])
        layers.append({
            "w_ih": w_ih.astype(jnp.bfloat16),
            "b_gi": b_gi,
            "w_hh": w_hh.astype(jnp.bfloat16),
            "b_hn": b_hn,
        })
    prep["gru"] = layers

    O = params["fc_w"].shape[0]
    fc_t = params["fc_w"].T                      # (2H, O)
    fc_p = jnp.zeros((2 * Hp, O), jnp.float32)
    fc_p = fc_p.at[:H, :].set(fc_t[:H, :])
    fc_p = fc_p.at[Hp:Hp + H, :].set(fc_t[H:2 * H, :])
    prep["fc_w_t"] = fc_p
    prep["fc_b"] = params["fc_b"].reshape(1, O)
    return prep


# ----------------------------------------------------------------------------
# Model wrapper (glue in plain JAX: embedding gather, padding, transposes).
# ----------------------------------------------------------------------------
def improved_gru_forward(prep, tokens):
    # tokens: (B, T) int32 -> (B, output_dim) f32
    H, Hp = prep["H"], prep["Hp"]
    B, T = tokens.shape
    Bp = _round_up(B, 8)
    vmem_limit = _vmem_limit_bytes()

    # Embedding gather (glue); table pre-padded to Ep lanes and stored bf16.
    x = jnp.take(prep["embedding"], tokens, axis=0)            # (B, T, Ep) bf16
    # TODO(synk): nn.Dropout is identity in eval mode; no random masking applied.
    if Bp != B:
        x = jnp.pad(x, ((0, Bp - B), (0, 0), (0, 0)))
    x = jnp.transpose(x, (1, 0, 2))                            # (T, Bp, Ep) time-major

    tc, Tp = _choose_time_chunk(T, Bp, Hp, vmem_limit)
    if Tp != T:
        x = jnp.pad(x, ((0, Tp - T), (0, 0), (0, 0)))          # padded steps masked in-kernel

    out = None
    for layer in prep["gru"]:
        Kp = layer["w_ih"].shape[0]
        # Hoisted direction+gate-fused input projection: one (M,Kp)x(Kp,6Hp) matmul, bf16 out.
        gi = input_proj(x.reshape(Tp * Bp, Kp), layer["w_ih"], layer["b_gi"], vmem_limit)
        gi = gi.reshape(Tp, Bp, 6 * Hp)
        # Serial bidirectional recurrence; directions split over a parallel grid axis.
        out = bigru_layer(gi, layer["w_hh"], layer["b_hn"], tc, T, vmem_limit)
        x = out        # (Tp, Bp, 2Hp) bf16 feeds the next layer directly (no concat glue)

    # cat(h[-2], h[-1]) == cat(final forward hidden (t=T-1), final backward hidden (t=0))
    hidden = jnp.concatenate([out[T - 1, :, :Hp], out[0, :, Hp:]], axis=-1)   # (Bp, 2Hp)
    logits = linear(hidden, prep["fc_w_t"], prep["fc_b"])                     # (Bp, O)
    return logits[:B]


# ----------------------------------------------------------------------------
# Pure-JAX reference (PyTorch GRU semantics, f32) for numerical sanity check only.
# ----------------------------------------------------------------------------
def _ref_gru_dir(x_seq, w_ih, w_hh, b_ih, b_hh):
    T, B, _ = x_seq.shape
    H = w_hh.shape[1]

    def step(h, x):
        gi = x @ w_ih.T + b_ih
        gh = h @ w_hh.T + b_hh
        i_r, i_z, i_n = jnp.split(gi, 3, axis=-1)
        h_r, h_z, h_n = jnp.split(gh, 3, axis=-1)
        r = jax.nn.sigmoid(i_r + h_r)
        z = jax.nn.sigmoid(i_z + h_z)
        n = jnp.tanh(i_n + r * h_n)
        h_new = (1.0 - z) * n + z * h
        return h_new, h_new

    _, outs = jax.lax.scan(step, jnp.zeros((B, H), jnp.float32), x_seq)
    return outs


def _ref_forward(params, tokens):
    x = jnp.take(params["embedding"], tokens, axis=0)
    x = jnp.transpose(x, (1, 0, 2))
    hf = hb = None
    for p in params["gru"]:
        of = _ref_gru_dir(x, p["w_ih_f"], p["w_hh_f"], p["b_ih_f"], p["b_hh_f"])
        obr = _ref_gru_dir(x[::-1], p["w_ih_b"], p["w_hh_b"], p["b_ih_b"], p["b_hh_b"])
        hf, hb = of[-1], obr[-1]
        x = jnp.concatenate([of, obr[::-1]], axis=-1)
    hidden = jnp.concatenate([hf, hb], axis=-1)
    return hidden @ params["fc_w"].T + params["fc_b"]


# ----------------------------------------------------------------------------
# Deterministic parameter construction (PyTorch-style init, synthetic).
# ----------------------------------------------------------------------------
def init_params(key, vocab_size, embedding_dim, hidden_dim, output_dim, n_layers):
    keys = jax.random.split(key, 2 + n_layers)
    params = {}
    params["embedding"] = jax.random.normal(
        keys[0], (vocab_size, embedding_dim), jnp.float32)

    bound = 1.0 / np.sqrt(hidden_dim)
    gru_layers = []
    for layer in range(n_layers):
        e_in = embedding_dim if layer == 0 else 2 * hidden_dim
        lk = jax.random.split(keys[1 + layer], 8)
        u = lambda k, shape: jax.random.uniform(
            k, shape, jnp.float32, minval=-bound, maxval=bound)
        gru_layers.append({
            "w_ih_f": u(lk[0], (3 * hidden_dim, e_in)),
            "w_hh_f": u(lk[1], (3 * hidden_dim, hidden_dim)),
            "b_ih_f": u(lk[2], (3 * hidden_dim,)),
            "b_hh_f": u(lk[3], (3 * hidden_dim,)),
            "w_ih_b": u(lk[4], (3 * hidden_dim, e_in)),
            "w_hh_b": u(lk[5], (3 * hidden_dim, hidden_dim)),
            "b_ih_b": u(lk[6], (3 * hidden_dim,)),
            "b_hh_b": u(lk[7], (3 * hidden_dim,)),
        })
    params["gru"] = gru_layers

    fc_bound = 1.0 / np.sqrt(2 * hidden_dim)
    fk = jax.random.split(keys[1 + n_layers], 2)
    params["fc_w"] = jax.random.uniform(
        fk[0], (output_dim, 2 * hidden_dim), jnp.float32, minval=-fc_bound, maxval=fc_bound)
    params["fc_b"] = jax.random.uniform(
        fk[1], (output_dim,), jnp.float32, minval=-fc_bound, maxval=fc_bound)
    return params


if __name__ == "__main__":
    # Small shapes consistent with the module's forward.
    vocab_size, embedding_dim, hidden_dim, output_dim, n_layers = 50, 16, 32, 4, 2
    B, T = 2, 8

    key = jax.random.PRNGKey(0)
    pkey, tkey = jax.random.split(key)
    params = init_params(pkey, vocab_size, embedding_dim, hidden_dim, output_dim, n_layers)
    tokens = jax.random.randint(tkey, (B, T), 0, vocab_size, dtype=jnp.int32)

    prep = prepare_params(params, hidden_dim)
    out = improved_gru_forward(prep, tokens)
    out = jax.block_until_ready(out)
    assert out.shape == (B, output_dim)

    ref = jax.block_until_ready(_ref_forward(params, tokens))
    # bf16 weights + bf16 gi/activation storage (f32 accumulation) -> looser tolerance.
    np.testing.assert_allclose(np.asarray(out), np.asarray(ref), rtol=8e-2, atol=4e-2)

    print("KERNEL_OK")
</pallas_src>

<mosaic_0001>
module attributes {stable_mosaic.version = 11 : i64} {
  func.func @_proj_kernel(%arg0: i32, %arg1: i32, %arg2: memref<64x128xbf16, #tpu.memory_space<vmem>>, %arg3: memref<128x384xbf16, #tpu.memory_space<vmem>>, %arg4: memref<1x384xf32, #tpu.memory_space<vmem>>, %arg5: memref<64x384xbf16, #tpu.memory_space<vmem>>) attributes {dimension_semantics = [#tpu.dimension_semantics<parallel>, #tpu.dimension_semantics<parallel>], iteration_bounds = array<i64: 1, 2>, scalar_prefetch = 0 : i64, scratch_operands = 0 : i64, tpu.core_type = #tpu.core_type<tc>, window_params = [{transform_indices = @transform_0, window_bounds = array<i64: 64, 128>}, {transform_indices = @transform_1, window_bounds = array<i64: 128, 384>}, {transform_indices = @transform_2, window_bounds = array<i64: 1, 384>}, {transform_indices = @transform_3, window_bounds = array<i64: 64, 384>}]} {
    %c0 = arith.constant 0 : index
    %c0_0 = arith.constant 0 : index
    %0 = vector.load %arg2[%c0, %c0_0] : memref<64x128xbf16, #tpu.memory_space<vmem>>, vector<64x128xbf16>
    %c0_1 = arith.constant 0 : index
    %c0_2 = arith.constant 0 : index
    %1 = vector.load %arg3[%c0_1, %c0_2] : memref<128x384xbf16, #tpu.memory_space<vmem>>, vector<128x384xbf16>
    %cst = arith.constant dense<0.000000e+00> : vector<64x384xf32>
    %2 = tpu.matmul %0, %1, %cst {dimension_numbers = #tpu.dot_dimension_numbers<[1], [0], [0], [1], [0, 0, 1, 1], [], []>} : vector<64x128xbf16>, vector<128x384xbf16>, vector<64x384xf32> -> vector<64x384xf32>
    %c0_3 = arith.constant 0 : index
    %c0_4 = arith.constant 0 : index
    %3 = vector.load %arg4[%c0_3, %c0_4] : memref<1x384xf32, #tpu.memory_space<vmem>>, vector<1x384xf32>
    %4 = vector.broadcast %3 : vector<1x384xf32> to vector<64x384xf32>
    %5 = arith.addf %2, %4 : vector<64x384xf32>
    %6 = arith.truncf %5 : vector<64x384xf32> to vector<64x384xbf16>
    %c0_5 = arith.constant 0 : index
    %c0_6 = arith.constant 0 : index
    %7 = vector.load %arg5[%c0_5, %c0_6] : memref<64x384xbf16, #tpu.memory_space<vmem>>, vector<64x384xbf16>
    tpu.vector_store %arg5[%c0_5, %c0_6], %6 {strides = array<i32>} : memref<64x384xbf16, #tpu.memory_space<vmem>>, vector<64x384xbf16>,
    return
  }
  func.func @transform_0(%arg0: i32, %arg1: i32) -> (i32, i32) {
    %c0_i32 = arith.constant 0 : i32
    %c0_i32_0 = arith.constant 0 : i32
    return %arg0, %c0_i32 : i32, i32
  }
  func.func @transform_1(%arg0: i32, %arg1: i32) -> (i32, i32) {
    %c0_i32 = arith.constant 0 : i32
    %c0_i32_0 = arith.constant 0 : i32
    return %c0_i32, %arg1 : i32, i32
  }
  func.func @transform_2(%arg0: i32, %arg1: i32) -> (i32, i32) {
    %c0_i32 = arith.constant 0 : i32
    %c0_i32_0 = arith.constant 0 : i32
    return %c0_i32, %arg1 : i32, i32
  }
  func.func @transform_3(%arg0: i32, %arg1: i32) -> (i32, i32) {
    %c0_i32 = arith.constant 0 : i32
    return %arg0, %arg1 : i32, i32
  }
}

</mosaic_0001>

<bundles_post_ra>
// kernel: tpu_custom_call.1
= control target key start
LH: loop header
LB: loop body
LE: loop exit
PB: predicated region body
PF: predicated region fallthrough
CT: control target
= control target key end

     0   :  { %8 = vsyncpa [#allocation3], 0  ;;  %s1527_s0 = inlined_call_operand.hbm [shape: bf16[64,128], index: 0, kind: input, shape index: {}]   ;;  %s1528_s1 = inlined_call_operand.hbm [shape: bf16[128,768], index: 1, kind: input, shape index: {}]   ;;  %s1529_s2 = inlined_call_operand.vmem [shape: f32[1,768], index: 2, kind: input, shape index: {}]   ;;  %s1530_s3 = inlined_call_operand.hbm [shape: bf16[64,768], index: 3, kind: output, shape index: {}]  }
   0x1   :  { %9 = vsyncpa [#allocation6], 0 }
   0x2   :  { %11 = vsyncpa [#allocation6 + $0x1], 0 }
   0x3   :  { %12 = vsyncpa [#allocation4], 0 }
   0x4   :  { %14 = vsyncpa [#allocation4 + $0x1], 0  ;;  %s1225_s12 = smov 0   ;;  %s1227_s13 = smov 0  }
   0x5   :  { %s1229_s14 = smov 0   ;;  %s1231_s15 = smov 0  }
   0x6   :  { %s1233_s16 = smov 0   ;;  %s1235_s17 = smov 0  }
   0x7 LB: > { %s817_s18 = sadd.s32 4294967295, %s1191_s17   ;;  %s818_s19 = sadd.s32 4294967294, %s1191_s17   ;;  %s1191_s17 = sphi %s1235_s17, %s20_s17   ;;  %s1187_s16 = sphi %s1233_s16, %s1559_s16   ;;  %s1183_s15 = sphi %s1231_s15, %s1558_s15   ;;  %s1179_s14 = sphi %s1229_s14, %s1557_s14   ;;  %s1175_s13 = sphi %s1227_s13, %s1556_s13   ;;  %s1171_s12 = sphi %s1225_s12, %s1555_s12  }
   0x8   : > { %p72_p0 = scmp.ne.s32.totalorder %s1179_s14, %s1175_s13  ;;  %p73_p1 = scmp.eq.s32.totalorder %s1191_s17, 0 }
   0x9   : > { %p78_p2 = scmp.ne.s32.totalorder %s1175_s13, %s1171_s12  ;;  %p1263_p3 = scmp.eq.s32.totalorder %s817_s18, 0 }
   0xa   : > { %p130_p4 = scmp.eq.s32.totalorder %s817_s18, 1  ;;  %p1267_p5 = por %p73_p1, %p72_p0 }
   0xb   : > { %s1537_s21 = scalar_select %p1263_p3, 1, 0 }
   0xc   : > { %p136_p6 = scmp.eq.s32.totalorder %s818_s19, 1  ;;  %p1273_p7 = por %p1263_p3, %p78_p2 }
   0xd   : > { %p1277_p8 = por %p130_p4, %p72_p0  ;;  %p819_p10 = scmp.ge.s32.totalorder %s1191_s17, 1 }
   0xe   : > { %s1539_s23 = scalar_select %p1273_p7, 1, 0 }
   0xf   : > { %s1540_s24 = scalar_select %p1277_p8, 1, 0 }
  0x10   : > { %p1281_p9 = por %p136_p6, %p78_p2  ;;  %p143_p11 = scmp.lt.s32.totalorder %s1191_s17, 3 }
  0x11   : > { %s1193_s27 = smov [#allocation2]   ;;  %p950_p1 = scmp.lt.s32.totalorder %s1191_s17, 2 }
  0x12   : > { %s1541_s25 = scalar_select %p1281_p9, 1, 0 }
  0x13   : > { %p1287_p12 = pnand %p819_p10, %p143_p11  ;;  %s158_s28 = sshll.u32 %s1193_s27, 4  ;;  %s1291_s28 = int_to_ptr.vmem [resolvable:$true] %s158_s28 }
  0x14   : > { %p1305_p4 = pnand %p950_p1, %p1267_p5  ;;  %s29_s4 = sadd.s32 1, %s1187_s16 }
  0x15   : > { %s1542_s26 = scalar_select %p1287_p12, 1, 0 }
  0x16   : > { %p937_p13 = pneg %p1287_p12  ;;  %p1310_p6 = scmp.ge.s32.totalorder %s29_s4, 2 }
  0x17   : > { %s1544_s30 = scalar_select %p1305_p4, 1, 0 }
  0x18   : > { %p1299_p2 = pnand %p937_p13, %p1263_p3  ;;  %s1047_s8 = scalar_lea.hbm %s1527_s0, 512 }
  0x19   : > { %s1545_s5 = scalar_select %p1310_p6, 1, 0 }
  0x1a   : > { %p1048_p10 = scmp.ne.s32.totalorder %s1527_s0, %s1047_s8  ;;  %p1049_p11 = pneg %p1299_p2 }
  0x1b   : > { %p1054_p1 = scmp.lt.u32.totalorder %s1047_s8, %s1527_s0 }
  0x1c   : > { %p1050_p13 = pnand %p1049_p11, %p1048_p10 }
  0x1e   : > { %p1051_p5 = pneg %p1050_p13 }
  0x20   : > { %p1056_p0 = pnand %p1054_p1, %p1051_p5 }
  0x22   : > { %1059 = shalt.err (!%p1056_p0)
}
  0x23   : > { %s1060_s19 = scalar_lea.vmem %s1291_s28, 512  ;;  %p1068_p3 = scmp.lt.s32.totalorder %s1291_s28, %s1291_s28 }
  0x24   : > { %p1061_p9 = scmp.ne.s32.totalorder %s1291_s28, %s1060_s19  ;;  %p1069_p12 = scmp.lt.s32.totalorder %s1060_s19, %s1060_s19 }
  0x26   : > { %p1063_p8 = pnand %p1061_p9, %p1049_p11  ;;  %p1070_p4 = por %p1069_p12, %p1068_p3 }
  0x28   : > { %p1064_p7 = pneg %p1063_p8 }
  0x2a   : > { %p1071_p6 = pnand %p1070_p4, %p1064_p7 }
  0x2c   : > { %1074 = shalt.err (!%p1071_p6)
}
  0x2d   : > { %s1194_s22 = smov 64   ;;  %s1195_s27 = smov 4  }
  0x2e   : > { %940 = dma.hbm_to_vmem [thread:$0]  (!%p1299_p2), %s1527_s0, 512, %s1291_s28, [#allocation3], %s1194_s22, %s1194_s22, %s1195_s27  }
  0x2f   : > { %s172_s8 = sand.u32 1, %s1179_s14   ;;  %p1546_p3 = scmp.ne.s32.totalorder %s1545_s5, 0 }
  0x30   : > { %s926_s9 = smul.u32 192, %s172_s8  ;;  %s1547_s22 = sadd.s32 1, %s1179_s14 }
  0x31   : > { %s1561_s4 = smov (%p1546_p3, %s29_s4), 0  ;;  %s872_s11 = smul.u32 192, %s1187_s16 }
  0x32   : > { %s62_s10 = ssub.s32 %s1187_s16, %s1561_s4  ;;  %s176_s28 = scalar_lea.vmem [#allocation5], %s926_s9 }
  0x33   : > { %p63_p7 = scmp.eq.s32.totalorder %s62_s10, 0  ;;  %s1346_s20 = scalar_lea.hbm %s1528_s1, %s872_s11 }
  0x34   : > { %s183_s29 = sshll.u32 %s176_s28, 4  ;;  %s1355_s27 = scalar_lea.sflag [#allocation6], %s172_s8  ;;  %s1353_s29 = int_to_ptr.vmem [resolvable:$true] %s183_s29 }
  0x35   : > { %s1351_s5 = scalar_select %p63_p7, %s1179_s14, %s1547_s22  }
  0x36   : > { %s1075_s6 = scalar_lea.hbm %s1346_s20, 3072  ;;  %p1548_p9 = scmp.ne.s32.totalorder %s1544_s30, 0 }
  0x37   : > { %p1076_p8 = scmp.ne.s32.totalorder %s1346_s20, %s1075_s6  ;;  %s1080_s9 = scalar_lea.hbm %s1528_s1, 6144 }
  0x38   : > { %p1077_p12 = pneg %p1548_p9  ;;  %p1081_p4 = scmp.lt.u32.totalorder %s1346_s20, %s1528_s1 }
  0x39   : > { %p1082_p6 = scmp.lt.u32.totalorder %s1080_s9, %s1075_s6  ;;  %p1084_p11 = scmp.lt.u32.totalorder %s1075_s6, %s1346_s20 }
  0x3a   : > { %p1078_p0 = pnand %p1077_p12, %p1076_p8 }
  0x3b   : > { %p1083_p10 = por %p1082_p6, %p1081_p4 }
  0x3c   : > { %p1079_p2 = pneg %p1078_p0 }
  0x3d   : > { %p1085_p13 = por %p1084_p11, %p1083_p10 }
  0x3f   : > { %p1086_p5 = pnand %p1085_p13, %p1079_p2 }
  0x41   : > { %1089 = shalt.err (!%p1086_p5)
}
  0x42   : > { %s1090_s8 = scalar_lea.vmem %s1353_s29, 3072  ;;  %s1196_s19 = smov [#allocation5]  }
  0x43   : > { %p1091_p1 = scmp.ne.s32.totalorder %s1353_s29, %s1090_s8  ;;  %s1095_s28 = sshll.u32 %s1196_s19, 4  ;;  %s1096_s28 = int_to_ptr.vmem [resolvable:$false] %s1095_s28 }
  0x44   : > { %s1097_s22 = scalar_lea.vmem %s1096_s28, 6144  ;;  %p1098_p8 = scmp.lt.s32.totalorder %s1353_s29, %s1096_s28 }
  0x45   : > { %p1093_p3 = pnand %p1091_p1, %p1077_p12  ;;  %p1099_p0 = scmp.lt.s32.totalorder %s1097_s22, %s1090_s8 }
  0x47   : > { %p1094_p7 = pneg %p1093_p3  ;;  %p1100_p4 = por %p1099_p0, %p1098_p8 }
  0x49   : > { %p1101_p6 = pnand %p1100_p4, %p1094_p7 }
  0x4b   : > { %1104 = shalt.err (!%p1101_p6)
}
  0x4c   : > { %s1197_s6 = smov 384   ;;  %s1198_s7 = smov 192  }
  0x4d   : > { %s1199_s10 = smov 12   ;;  %p1549_p12 = scmp.ne.s32.totalorder %s1542_s26, 0 }
  0x4e   : > { %944 = dma.hbm_to_vmem [thread:$0]  (!%p1548_p9), %s1346_s20, 3072, %s1353_s29, %s1355_s27, %s1197_s6, %s1198_s7, %s1199_s10  }
  0x4f   : > { %203 = sbr.rel (%p1549_p12) target bundleno = 384 (0x180), region = 32  ;;  %p1550_p2 = scmp.ne.s32.totalorder (!%p1549_p12), %s1537_s21, 0 }
  0x56   : > { %1158 = dma.done.wait (%p1550_p2), [#allocation3], 512  }
  0x57   : > { %1160 = vsyncadd (%p1550_p2), [#allocation3], 4294966784  ;;  %s1390_s9 = sand.u32 1, %s1175_s13   ;;  %p1551_p9 = scmp.ne.s32.totalorder %s1539_s23, 0 }
  0x58   : > { %s927_s11 = smul.u32 192, %s1390_s9  ;;  %s210_s18 = scalar_lea.sflag [#allocation6], %s1390_s9 }
  0x5a   : > { %s1394_s8 = scalar_lea.vmem [#allocation5], %s927_s11 }
  0x5b   : > { %1162 = dma.done.wait (%p1551_p9), %s210_s18, 3072  }
  0x5c   : > { %1164 = vsyncadd (%p1551_p9), %s210_s18, 4294964224  ;;  %v1200_v0 = vmov 0   ;;  %v1011_v1 = vld [vmem:[%s1394_s8 + $0x4] ss:$12 sps:$4 sm:$0xff]   ;;  %v1013_v2 = vld [vmem:[%s1394_s8] ss:$12 sps:$4 sm:$0xff]   ;;  %v292_v29 = vlaneseq }
  0x5d   : > { %491 = vmatprep.mubr.bf16.mxu0 %v1200_v0  ;;  %459 = vmatprep.subr.bf16.mxu0 %v1011_v1  ;;  %v1014_v3 = vld [vmem:[%s1394_s8 + $0x1c] ss:$12 sps:$4 sm:$0xff]   ;;  %v1016_v4 = vld [vmem:[%s1394_s8 + $0x18] ss:$12 sps:$4 sm:$0xff]   ;;  %v1017_v5 = vld [vmem:[%s1394_s8 + $0x34] ss:$12 sps:$4 sm:$0xff]  }
  0x5e   : > { %460 = vmatpush1.bf16.msra.mxu0 %v1013_v2  ;;  %v1023_v6 = vld [vmem:[%s1394_s8 + $0x8] ss:$12 sps:$4 sm:$0xff]   ;;  %v1019_v7 = vld [vmem:[%s1394_s8 + $0x30] ss:$12 sps:$4 sm:$0xff]   ;;  %v1020_v8 = vld [vmem:[%s1394_s8 + $0x4c] ss:$12 sps:$4 sm:$0xff]  }
  0x5f   : > { %461 = vmatprep.subr.bf16.mxu0 %v1014_v3  ;;  %902 = vmatprep.subr.bf16.mxu1 %v1023_v6  ;;  %v1027_v9 = vld [vmem:[%s1394_s8 + $0x20] ss:$12 sps:$4 sm:$0xff]   ;;  %v1031_v10 = vld [vmem:[%s1394_s8 + $0x38] ss:$12 sps:$4 sm:$0xff]   ;;  %v1022_v11 = vld [vmem:[%s1394_s8 + $0x48] ss:$12 sps:$4 sm:$0xff]  }
  0x60   : > { %903 = vmatpush3.bf16.msra.mxu1 %v1023_v6  ;;  %v1024_v12 = vld [vmem:[%s1394_s8 + $0x64] ss:$12 sps:$4 sm:$0xff]   ;;  %v1026_v13 = vld [vmem:[%s1394_s8 + $0x60] ss:$12 sps:$4 sm:$0xff]   ;;  %v1028_v15 = vld [vmem:[%s1394_s8 + $0x7c] ss:$12 sps:$4 sm:$0xff]  }
  0x61   : > { %904 = vmatprep.subr.bf16.mxu1 %v1027_v9  ;;  %v1035_v14 = vld [vmem:[%s1394_s8 + $0x50] ss:$12 sps:$4 sm:$0xff]   ;;  %v1040_v16 = vld [vmem:[#allocation2] sm:$0xff]   ;;  %v1039_v17 = vld [vmem:[%s1394_s8 + $0x68] ss:$12 sps:$4 sm:$0xff]   ;;  %s242_s20 = smul.u32 3, %s1183_s15 }
  0x62   : > { %462 = vmatpush1.bf16.msra.mxu0 %v1016_v4  ;;  %918 = vmatprep.mubr.bf16.mxu1 %v1040_v16  ;;  %v1030_v18 = vld [vmem:[%s1394_s8 + $0x78] ss:$12 sps:$4 sm:$0xff]   ;;  %v1032_v19 = vld [vmem:[%s1394_s8 + $0x94] ss:$12 sps:$4 sm:$0xff]   ;;  %v1034_v21 = vld [vmem:[%s1394_s8 + $0x90] ss:$12 sps:$4 sm:$0xff]  }
  0x63   : > { %463 = vmatprep.subr.bf16.mxu0 %v1017_v5  ;;  %v1041_v20 = vld [vmem:[%s1394_s8 + $0x80] ss:$12 sps:$4 sm:$0xff]   ;;  %v1042_v23 = vld [vmem:[%s1394_s8 + $0x98] ss:$12 sps:$4 sm:$0xff]   ;;  %v1038_v24 = vld [vmem:[%s1394_s8 + $0xa8] ss:$12 sps:$4 sm:$0xff]  }
  0x64   : > { %905 = vmatpush3.bf16.msra.mxu1 %v1027_v9  ;;  %v1036_v22 = vld [vmem:[%s1394_s8 + $0xac] ss:$12 sps:$4 sm:$0xff]   ;;  %v1044_v25 = vld [vmem:[%s1394_s8 + $0xb0] ss:$12 sps:$4 sm:$0xff]   ;;  %p243_p10 = scmp.lt.s32.totalorder %s242_s20, 5  ;;  %v293_v30 = vshrl.u32 %v292_v29, 7 }
  0x65   : > { %906 = vmatprep.subr.bf16.mxu1 %v1031_v10  ;;  %v1043_v26 = vld [vmem:[#allocation2 + $0x8] sm:$0xff]   ;;  %v1045_v27 = vld [vmem:[#allocation2 + $0x10] sm:$0xff]   ;;  %v1046_v28 = vld [vmem:[#allocation2 + $0x18] sm:$0xff]   ;;  %s928_s30 = smul.u32 96, %s1390_s9  ;;  %p1552_p13 = scmp.ne.s32.totalorder %s1540_s24, 0 }
  0x66   : > { %464 = vmatpush1.bf16.msra.mxu0 %v1019_v7  ;;  %s1563_s20 = smov (!%p243_p10, %s242_s20), 5  ;;  %v294_v31 = vsub.s32 0, %v293_v30  ;;  %v298_v33 = vsub.s32 1, %v293_v30  ;;  %v302_v36 = vsub.s32 2, %v293_v30  ;;  %s889_s27 = smul.u32 192, %s1183_s15 }
  0x67   : > { %465 = vmatprep.subr.bf16.mxu0 %v1020_v8  ;;  %s245_s26 = scalar_lea.vmem %s1529_s2, %s1563_s20  ;;  %s1441_s29 = scalar_lea.vmem [#allocation7], %s928_s30 }
  0x68   : > { %907 = vmatpush3.bf16.msra.mxu1 %v1031_v10  ;;  %v290_v32 = vld [vmem:[%s245_s26] sm:$0x7]  ;;  %s710_s19 = sshll.u32 %s1441_s29, 4  ;;  %s1474_s6 = scalar_lea.hbm %s1530_s3, %s889_s27  ;;  %s1476_s19 = int_to_ptr.vmem [resolvable:$true] %s710_s19 }
  0x69   : > { %908 = vmatprep.subr.bf16.mxu1 %v1035_v14  ;;  %v1432_v34 = vrot.slane %v290_v32, %v294_v31  ;;  %v1434_v35 = vrot.slane %v290_v32, %v298_v33  ;;  %v303_v44 = vrot.slane %v290_v32, %v302_v36  ;;  %s694_s15 = scalar_lea.sflag [#allocation4], %s1390_s9  ;;  %s1105_s7 = scalar_lea.vmem %s1476_s19, 1536 }
  0x6a   : > { %466 = vmatpush1.bf16.msra.mxu0 %v1022_v11  ;;  %p1106_p11 = scmp.ne.s32.totalorder %s1476_s19, %s1105_s7  ;;  %s1201_s10 = smov [#allocation7]  }
  0x6b   : > { %467 = vmatprep.subr.bf16.mxu0 %v1024_v12  ;;  %s1109_s11 = sshll.u32 %s1201_s10, 4  ;;  %s1110_s11 = int_to_ptr.vmem [resolvable:$false] %s1109_s11 }
  0x6c   : > { %909 = vmatpush3.bf16.msra.mxu1 %v1035_v14  ;;  %p1107_p5 = pnand %p1106_p11, %p1552_p13  ;;  %s1111_s18 = scalar_lea.vmem %s1110_s11, 3072 }
  0x6d   : > { %910 = vmatprep.subr.bf16.mxu1 %v1039_v17  ;;  %p1112_p3 = scmp.lt.s32.totalorder %s1476_s19, %s1110_s11  ;;  %p1113_p7 = scmp.lt.s32.totalorder %s1111_s18, %s1105_s7 }
  0x6e   : > { %468 = vmatpush1.bf16.msra.mxu0 %v1026_v13  ;;  %p1108_p1 = pneg %p1107_p5 }
  0x6f   : > { %469 = vmatprep.subr.bf16.mxu0 %v1028_v15  ;;  %p1114_p8 = por %p1113_p7, %p1112_p3 }
  0x70   : > { %911 = vmatpush3.bf16.msra.mxu1 %v1039_v17 }
  0x71   : > { %912 = vmatprep.subr.bf16.mxu1 %v1041_v20  ;;  %p1115_p0 = pnand %p1114_p8, %p1108_p1 }
  0x72   : > { %470 = vmatpush1.bf16.msra.mxu0 %v1030_v18 }
  0x73   : > { %471 = vmatprep.subr.bf16.mxu0 %v1032_v19 }
  0x74   : > { %913 = vmatpush3.bf16.msra.mxu1 %v1041_v20 }
  0x75   : > { %914 = vmatprep.subr.bf16.mxu1 %v1042_v23 }
  0x76   : > { %472 = vmatpush1.bf16.msra.mxu0 %v1034_v21 }
  0x77   : > { %473 = vmatprep.subr.bf16.mxu0 %v1036_v22 }
  0x78   : > { %915 = vmatpush3.bf16.msra.mxu1 %v1042_v23 }
  0x79   : > { %916 = vmatprep.subr.bf16.mxu1 %v1044_v25 }
  0x7a   : > { %474 = vmatpush1.bf16.msra.mxu0 %v1038_v24 }
  0x7c   : > { %917 = vmatpush3.bf16.msra.mxu1 %v1044_v25 }
  0x7d   : > { %492 = vmatmul.mubr.bf16.vlgmr.msra.gmra.mrb[0].mxu0 %v1040_v16 }
  0x7e   : > { %501 = vmatprep.mubr.bf16.mxu0 %v1200_v0 }
  0x7f   : > { %919 = vmatmul.mubr.bf16.vlgmr.msra.gmra.mrb[0].mxu1 %v1043_v26 }
  0x80   : > { %922 = vmatprep.mubr.bf16.mxu1 %v1045_v27 }
  0x85   : > { %502 = vmatmul.mubr.bf16.gmra.mrb[4].mxu0 %v1043_v26 }
  0x86   : > { %511 = vmatprep.mubr.bf16.mxu0 %v1200_v0 }
  0x87   : > { %923 = vmatmul.mubr.bf16.gmra.mrb[4].mxu1 %v1046_v28 }
  0x8d   : > { %512 = vmatmul.mubr.bf16.gmra.mrb[8].mxu0 %v1045_v27 }
  0x8e   : > { %521 = vmatprep.mubr.bf16.mxu0 %v1200_v0 }
  0x95   : > { %522 = vmatmul.mubr.bf16.gmra.mrb[12].mxu0 %v1046_v28 }
 0x150   : > { %v493_v37 = vpop.f32.mrb[0].mxu0 }
 0x151   : > { %v494_v38 = vadd.f32 %v493_v37, %v1432_v34  ;;  %v495_v39 = vpop.f32.mrb[1].mxu0 }
 0x152   : > { %v496_v40 = vadd.f32 %v495_v39, %v1434_v35  ;;  %v497_v41 = vpop.f32.mrb[2].mxu0  ;;  %v920_v48 = vpop.f32.mrb[0].mxu1 }
 0x153   : > { %v498_v42 = vadd.f32 %v497_v41, %v1432_v34  ;;  %v499_v43 = vpop.f32.mrb[3].mxu0  ;;  %v575_v49 = vadd.f32 %v920_v48, %v303_v44  ;;  %v566_v50 = vpop.f32.mrb[1].mxu1 }
 0x154   : > { %v873_v45 = vpack.c.bf16 %v496_v40, %v494_v38  ;;  %v500_v46 = vadd.f32 %v499_v43, %v1434_v35  ;;  %v567_v52 = vadd.f32 %v566_v50, %v303_v44  ;;  %v921_v53 = vpop.f32.mrb[2].mxu1 }
 0x155   : > { %v878_v56 = vpack.c.bf16 %v575_v49, %v575_v49  ;;  %v578_v57 = vadd.f32 %v921_v53, %v303_v44  ;;  %v569_v58 = vpop.f32.mrb[3].mxu1 }
 0x156   : > { %677 = vst [vmem:[%s1441_s29] sm:$0xff] %v873_v45  ;;  %v875_v47 = vpack.c.bf16 %v500_v46, %v498_v42  ;;  %v874_v61 = vpack.c.bf16 %v567_v52, %v567_v52  ;;  %v570_v62 = vadd.f32 %v569_v58, %v303_v44 }
 0x157   : > { %682 = vst [vmem:[%s1441_s29 + $0x20] sm:$0xf] %v878_v56  ;;  %v880_v1 = vpack.c.bf16 %v578_v57, %v578_v57 }
 0x158   : > { %679 = vst [vmem:[%s1441_s29 + $0xc] sm:$0xff] %v875_v47  ;;  %v503_v51 = vpop.f32.mrb[4].mxu0  ;;  %678 = vst [vmem:[%s1441_s29 + $0x8] sm:$0xf] %v874_v61  ;;  %v876_v4 = vpack.c.bf16 %v570_v62, %v570_v62 }
 0x159   : > { %v504_v54 = vadd.f32 %v503_v51, %v1432_v34  ;;  %v505_v55 = vpop.f32.mrb[5].mxu0  ;;  %684 = vst [vmem:[%s1441_s29 + $0x2c] sm:$0xf] %v880_v1 }
 0x15a   : > { %v506_v59 = vadd.f32 %v505_v55, %v1434_v35  ;;  %v507_v60 = vpop.f32.mrb[6].mxu0  ;;  %680 = vst [vmem:[%s1441_s29 + $0x14] sm:$0xf] %v876_v4  ;;  %v924_v6 = vpop.f32.mrb[4].mxu1 }
 0x15b   : > { %v508_v63 = vadd.f32 %v507_v60, %v1432_v34  ;;  %v509_v0 = vpop.f32.mrb[7].mxu0  ;;  %v591_v7 = vadd.f32 %v924_v6, %v303_v44  ;;  %v582_v8 = vpop.f32.mrb[5].mxu1 }
 0x15c   : > { %v877_v2 = vpack.c.bf16 %v506_v59, %v504_v54  ;;  %v510_v3 = vadd.f32 %v509_v0, %v1434_v35  ;;  %v583_v10 = vadd.f32 %v582_v8, %v303_v44  ;;  %v925_v11 = vpop.f32.mrb[6].mxu1 }
 0x15d   : > { %v886_v14 = vpack.c.bf16 %v591_v7, %v591_v7  ;;  %v594_v15 = vadd.f32 %v925_v11, %v303_v44  ;;  %v585_v16 = vpop.f32.mrb[7].mxu1 }
 0x15e   : > { %681 = vst [vmem:[%s1441_s29 + $0x18] sm:$0xff] %v877_v2  ;;  %v879_v5 = vpack.c.bf16 %v510_v3, %v508_v63  ;;  %v882_v19 = vpack.c.bf16 %v583_v10, %v583_v10  ;;  %v586_v20 = vadd.f32 %v585_v16, %v303_v44 }
 0x15f   : > { %690 = vst [vmem:[%s1441_s29 + $0x50] sm:$0xf] %v886_v14  ;;  %v888_v23 = vpack.c.bf16 %v594_v15, %v594_v15 }
 0x160   : > { %683 = vst [vmem:[%s1441_s29 + $0x24] sm:$0xff] %v879_v5  ;;  %v513_v9 = vpop.f32.mrb[8].mxu0  ;;  %686 = vst [vmem:[%s1441_s29 + $0x38] sm:$0xf] %v882_v19  ;;  %v884_v26 = vpack.c.bf16 %v586_v20, %v586_v20 }
 0x161   : > { %v514_v12 = vadd.f32 %v513_v9, %v1432_v34  ;;  %v515_v13 = vpop.f32.mrb[9].mxu0  ;;  %692 = vst [vmem:[%s1441_s29 + $0x5c] sm:$0xf] %v888_v23 }
 0x162   : > { %v516_v17 = vadd.f32 %v515_v13, %v1434_v35  ;;  %v517_v18 = vpop.f32.mrb[10].mxu0  ;;  %688 = vst [vmem:[%s1441_s29 + $0x44] sm:$0xf] %v884_v26 }
 0x163   : > { %v518_v21 = vadd.f32 %v517_v18, %v1432_v34  ;;  %v519_v22 = vpop.f32.mrb[11].mxu0 }
 0x164   : > { %v881_v24 = vpack.c.bf16 %v516_v17, %v514_v12  ;;  %v520_v25 = vadd.f32 %v519_v22, %v1434_v35 }
 0x166   : > { %685 = vst [vmem:[%s1441_s29 + $0x30] sm:$0xff] %v881_v24  ;;  %v883_v27 = vpack.c.bf16 %v520_v25, %v518_v21 }
 0x168   : > { %687 = vst [vmem:[%s1441_s29 + $0x3c] sm:$0xff] %v883_v27  ;;  %v523_v28 = vpop.f32.mrb[12].mxu0 }
 0x169   : > { %v524_v29 = vadd.f32 %v523_v28, %v1432_v34  ;;  %v525_v30 = vpop.f32.mrb[13].mxu0 }
 0x16a   : > { %v526_v31 = vadd.f32 %v525_v30, %v1434_v35  ;;  %v527_v32 = vpop.f32.mrb[14].mxu0 }
 0x16b   : > { %v528_v33 = vadd.f32 %v527_v32, %v1432_v34  ;;  %v529_v36 = vpop.f32.mrb[15].mxu0 }
 0x16c   : > { %v885_v37 = vpack.c.bf16 %v526_v31, %v524_v29  ;;  %v530_v38 = vadd.f32 %v529_v36, %v1434_v35 }
 0x16e   : > { %689 = vst [vmem:[%s1441_s29 + $0x48] sm:$0xff] %v885_v37  ;;  %v887_v39 = vpack.c.bf16 %v530_v38, %v528_v33 }
 0x170   : > { %691 = vst [vmem:[%s1441_s29 + $0x54] sm:$0xff] %v887_v39 }
 0x171   : > { %1118 = shalt.err (!%p1115_p0)
}
 0x172   : > { %s1119_s8 = scalar_lea.hbm %s1474_s6, 1536  ;;  %s1123_s23 = scalar_lea.hbm %s1530_s3, 3072 }
 0x173   : > { %p1120_p4 = scmp.ne.s32.totalorder %s1474_s6, %s1119_s8  ;;  %p1124_p2 = scmp.lt.u32.totalorder %s1474_s6, %s1530_s3 }
 0x174   : > { %p1125_p9 = scmp.lt.u32.totalorder %s1123_s23, %s1119_s8  ;;  %p1127_p11 = scmp.lt.u32.totalorder %s1119_s8, %s1474_s6 }
 0x175   : > { %p1121_p6 = pnand %p1120_p4, %p1552_p13 }
 0x176   : > { %p1126_p10 = por %p1125_p9, %p1124_p2 }
 0x177   : > { %p1122_p12 = pneg %p1121_p6 }
 0x178   : > { %p1128_p5 = por %p1127_p11, %p1126_p10 }
 0x17a   : > { %p1129_p1 = pnand %p1128_p5, %p1122_p12 }
 0x17c   : > { %1132 = shalt.err (!%p1129_p1)
}
 0x17d   : > { %s1202_s29 = smov 192   ;;  %s1203_s27 = smov 384  }
 0x17e   : > { %s1204_s28 = smov 12  }
 0x17f   : > { %935 = dma.vmem_to_hbm [thread:$0]  (%p1552_p13), %s1476_s19, 1536, %s1474_s6, %s694_s15, %s1202_s29, %s1203_s27, %s1204_s28  }
 0x180 PF: > { %s725_s22 = sand.u32 1, %s1171_s12   ;;  %p1553_p3 = scmp.ne.s32.totalorder %s1541_s25, 0 }
 0x181   : > { %p1554_p7 = scmp.ge.s32.totalorder %s1191_s17, 2  ;;  %s726_s7 = scalar_lea.sflag [#allocation4], %s725_s22 }
 0x183   : > { %p946_p8 = pnand %p1554_p7, %p1553_p3 }
 0x185   : > { %1166 = dma.done.wait (!%p946_p8), %s726_s7, 1536  }
 0x186   : > { %1168 = vsyncadd (!%p946_p8), %s726_s7, 4294965760  ;;  %s20_s17 = sadd.s32 1, %s1191_s17   ;;  %s1555_s12 = smov %s1175_s13 }
 0x187   : > { %p17_p0 = scmp.ge.s32.totalorder %s20_s17, 4   ;;  %s1556_s13 = smov %s1179_s14 }
 0x188   : > { %s1557_s14 = smov %s1351_s5  ;;  %s1558_s15 = smov %s1187_s16 }
 0x189   : > { %s1559_s16 = smov %s1561_s4  ;;  %19 = sbr.rel (!%p17_p0) target bundleno = 7 (0x7), region = 86 }
 0x190   :  { %731 = vsyncpa [#allocation3], 1 }
 0x191   :  { %733 = vsyncpa [#allocation3 + $0x1], 1 }
 0x192   :  { %734 = vsyncpa [#allocation6], 1 }
 0x193   :  { %736 = vsyncpa [#allocation6 + $0x1], 1 }
 0x194   :  { %737 = vsyncpa [#allocation4], 1 }
 0x195   :  { %739 = vsyncpa [#allocation4 + $0x1], 1 }

</bundles_post_ra>
